<compile_context>
chip_gen: v7x
topology: tpu7x:2x2x1
jax: 0.10.0
libtpu: 0.0.40
codegen_flags: <defaults>
</compile_context>

<pallas_src>
import jax
import jax.numpy as jnp
from jax.experimental import pallas as pl
from jax.experimental.pallas import tpu as pltpu


# --------------------------------------------------------------------------
# Kernels
# --------------------------------------------------------------------------

def _gelu_tanh(x):
    # 0.5 * x * (1 + tanh(sqrt(2/pi) * (x + 0.044715 * x^3)))
    c = jnp.sqrt(2.0 / jnp.pi).astype(x.dtype)
    return 0.5 * x * (1.0 + jnp.tanh(c * (x + 0.044715 * (x * x * x))))


def _partial_out(x_ref, w1_ref, b1_ref, w2_ref):
    """gelu(x @ W1_slice + b1_slice) @ W2_slice, accumulated in f32."""
    h = jnp.dot(x_ref[...], w1_ref[...], preferred_element_type=jnp.float32)
    h = _gelu_tanh(h + b1_ref[...])
    return jnp.dot(h.astype(w2_ref.dtype), w2_ref[...],
                   preferred_element_type=jnp.float32)


def _ffn_kernel_single(x_ref, w1_ref, b1_ref, w2_ref, b2_ref, o_ref):
    """Whole hidden dim in one pass: no accumulator at all."""
    out = _partial_out(x_ref, w1_ref, b1_ref, w2_ref) + b2_ref[...]
    o_ref[...] = out.astype(o_ref.dtype)


def _ffn_kernel_f32_acc(x_ref, w1_ref, b1_ref, w2_ref, b2_ref, o_ref):
    """H-tiled reduction; f32 output block is resident -> accumulate in place."""
    j = pl.program_id(1)
    partial = _partial_out(x_ref, w1_ref, b1_ref, w2_ref)

    @pl.when(j == 0)
    def _first():
        o_ref[...] = partial + b2_ref[...]

    @pl.when(j > 0)
    def _rest():
        o_ref[...] += partial


def _ffn_kernel_scratch_acc(x_ref, w1_ref, b1_ref, w2_ref, b2_ref, o_ref, acc_ref):
    """H-tiled reduction with f32 VMEM scratch (for non-f32 outputs)."""
    j = pl.program_id(1)
    partial = _partial_out(x_ref, w1_ref, b1_ref, w2_ref)

    @pl.when(j == 0)
    def _first():
        acc_ref[...] = partial

    @pl.when(j > 0)
    def _rest():
        acc_ref[...] += partial

    @pl.when(j == pl.num_programs(1) - 1)
    def _finalize():
        o_ref[...] = (acc_ref[...] + b2_ref[...]).astype(o_ref.dtype)


# --------------------------------------------------------------------------
# Tile planning helpers
# --------------------------------------------------------------------------

def _round_up(x, m):
    return ((x + m - 1) // m) * m


def _vmem_capacity_bytes():
    try:
        return int(pltpu.get_tpu_info().vmem_capacity_bytes)
    except Exception:
        return 64 * 1024 * 1024          # conservative fallback (v7x size)


def _pick_th(Hp, pref=512, single_pass_cap=1024):
    """Hp is a multiple of 128.  Pick a hidden tile that divides Hp exactly."""
    if Hp <= single_pass_cap:
        return Hp                        # small hidden dim: single pass
    for cand in range(pref, 127, -128):  # 512, 384, 256, 128
        if Hp % cand == 0:
            return cand
    return 128


def _vmem_footprint(tm, Ep, th, x_isz, w_isz, out_isz, need_acc):
    fp = 2 * tm * Ep * x_isz             # x tile (double-buffered)
    fp += 2 * tm * Ep * out_isz          # out tile (double-buffered)
    fp += 2 * Ep * th * w_isz            # W1 slice
    fp += 2 * th * w_isz                 # b1 slice
    fp += 2 * th * Ep * w_isz            # W2 slice
    fp += 2 * Ep * w_isz                 # b2
    fp += tm * th * 4                    # intermediate h tile (f32 temporaries)
    if need_acc:
        fp += tm * Ep * 4                # f32 scratch accumulator
    return fp


def _pick_tm(M, Ep, th, x_isz, w_isz, out_isz, need_acc, budget):
    """Largest row tile (weight-streaming intensity knob) that fits VMEM."""
    m_cap = _round_up(max(M, 1), 8)
    for cand in (1024, 768, 512, 384, 256, 128, 64, 32, 16, 8):
        tm = min(cand, m_cap)
        if _vmem_footprint(tm, Ep, th, x_isz, w_isz, out_isz, need_acc) <= budget:
            return tm
    return 8


# --------------------------------------------------------------------------
# Wrapper
# --------------------------------------------------------------------------

def prepare_ffn_params(w1, b1, w2, b2):
    """Pad weights to lane-aligned shapes ONCE (hoisted out of the hot path).

    Zero-padding is semantics-preserving:
      * extra E rows of W1 multiply zero-padded x columns -> h unchanged
      * extra H cols of W1/b1 are 0 -> gelu(0)=0, and the matching W2 rows are 0
      * extra E cols of W2/b2 only touch padded output columns (sliced off).
    """
    E, H = w1.shape
    assert w2.shape == (H, E), "w2 must be (H, E)"
    b1 = jnp.asarray(b1).reshape(1, H)
    b2 = jnp.asarray(b2).reshape(1, E)
    Ep = _round_up(E, 128)
    Hp = _round_up(H, 128)           # pad H only to lane width, NOT to th
    if (Ep, Hp) != (E, H):
        w1 = jnp.pad(w1, ((0, Ep - E), (0, Hp - H)))
        b1 = jnp.pad(b1, ((0, 0), (0, Hp - H)))
        w2 = jnp.pad(w2, ((0, Hp - H), (0, Ep - E)))
        b2 = jnp.pad(b2, ((0, 0), (0, Ep - E)))
    return {"w1": w1, "b1": b1, "w2": w2, "b2": b2,
            "E": E, "H": H, "Ep": Ep, "Hp": Hp}


def feed_forward_padded(x, params, *, tm=None, th=None, out_dtype=None):
    """x: [B, S, E] -> [B, S, E] using pre-padded params from prepare_ffn_params."""
    w1p, b1p, w2p, b2p = params["w1"], params["b1"], params["w2"], params["b2"]
    E, Ep, Hp = params["E"], params["Ep"], params["Hp"]

    B, S, E_in = x.shape
    assert E_in == E
    M = B * S
    out_dtype = jnp.dtype(out_dtype) if out_dtype is not None else jnp.dtype(x.dtype)

    # VMEM budget derived from the actual chip (v5e/v6e 128 MiB, v7x 64 MiB).
    vmem_cap = _vmem_capacity_bytes()
    vmem_limit = int(vmem_cap * 0.85)
    budget = int(vmem_limit * 0.8)       # headroom for compiler-internal scratch

    # Hidden tile: exact divisor of padded H (no wasted weight traffic).
    if th is None:
        th = _pick_th(Hp)
    assert th % 128 == 0 and Hp % th == 0, "th must be a 128-multiple divisor of padded H"
    nh = Hp // th

    out_is_f32 = out_dtype == jnp.float32
    need_acc = (nh > 1) and not out_is_f32

    x_isz = jnp.dtype(x.dtype).itemsize
    w_isz = jnp.dtype(w1p.dtype).itemsize
    out_isz = out_dtype.itemsize
    if tm is None:
        tm = _pick_tm(M, Ep, th, x_isz, w_isz, out_isz, need_acc, budget)
    tm = max(8, min(tm, _round_up(M, 8)))
    Mp = _round_up(M, tm)

    # Pad activations (cheap; weights were padded once at setup).
    x2d = x.reshape(M, E)
    if (Mp, Ep) != (M, E):
        x2d = jnp.pad(x2d, ((0, Mp - M), (0, Ep - E)))

    if nh == 1:
        grid = (Mp // tm,)
        in_specs = [
            pl.BlockSpec((tm, Ep), lambda i: (i, 0)),   # x rows tile
            pl.BlockSpec((Ep, th), lambda i: (0, 0)),   # W1 (whole)
            pl.BlockSpec((1, th), lambda i: (0, 0)),    # b1
            pl.BlockSpec((th, Ep), lambda i: (0, 0)),   # W2 (whole)
            pl.BlockSpec((1, Ep), lambda i: (0, 0)),    # b2
        ]
        out_specs = pl.BlockSpec((tm, Ep), lambda i: (i, 0))
        scratch_shapes = []
        kernel = _ffn_kernel_single
        dim_sem = ("parallel",)
    else:
        grid = (Mp // tm, nh)            # reduction (H) axis innermost
        in_specs = [
            pl.BlockSpec((tm, Ep), lambda i, j: (i, 0)),   # x rows tile
            pl.BlockSpec((Ep, th), lambda i, j: (0, j)),   # W1 hidden slice
            pl.BlockSpec((1, th), lambda i, j: (0, j)),    # b1 hidden slice
            pl.BlockSpec((th, Ep), lambda i, j: (j, 0)),   # W2 hidden slice
            pl.BlockSpec((1, Ep), lambda i, j: (0, 0)),    # b2
        ]
        out_specs = pl.BlockSpec((tm, Ep), lambda i, j: (i, 0))
        if out_is_f32:
            scratch_shapes = []          # accumulate directly into resident o_ref
            kernel = _ffn_kernel_f32_acc
        else:
            scratch_shapes = [pltpu.VMEM((tm, Ep), jnp.float32)]
            kernel = _ffn_kernel_scratch_acc
        dim_sem = ("parallel", "arbitrary")

    out2d = pl.pallas_call(
        kernel,
        out_shape=jax.ShapeDtypeStruct((Mp, Ep), out_dtype),
        grid_spec=pltpu.PrefetchScalarGridSpec(
            num_scalar_prefetch=0,
            grid=grid,
            in_specs=in_specs,
            out_specs=out_specs,
            scratch_shapes=scratch_shapes,
        ),
        compiler_params=pltpu.CompilerParams(
            dimension_semantics=dim_sem,
            vmem_limit_bytes=vmem_limit,
        ),
    )(x2d, w1p, b1p, w2p, b2p)

    if (Mp, Ep) != (M, E):
        out2d = out2d[:M, :E]
    return out2d.reshape(B, S, E)


def feed_forward(x, w1, b1, w2, b2, *, tm=None, th=None, out_dtype=None):
    """Convenience one-shot entry point (pads weights per call)."""
    return feed_forward_padded(x, prepare_ffn_params(w1, b1, w2, b2),
                               tm=tm, th=th, out_dtype=out_dtype)


# --------------------------------------------------------------------------
# Reference & test harness
# --------------------------------------------------------------------------

def feed_forward_ref(x, w1, b1, w2, b2):
    h = _gelu_tanh(jnp.dot(x, w1, precision=jax.lax.Precision.HIGHEST) + b1.reshape(-1))
    return jnp.dot(h, w2, precision=jax.lax.Precision.HIGHEST) + b2.reshape(-1)


def _make_params(key, E, H, dtype=jnp.float32):
    k1, kb1, k2, kb2 = jax.random.split(key, 4)
    bound1 = 1.0 / jnp.sqrt(E)
    bound2 = 1.0 / jnp.sqrt(H)
    w1 = jax.random.uniform(k1, (E, H), dtype, -bound1, bound1)
    b1 = jax.random.uniform(kb1, (1, H), dtype, -bound1, bound1)
    w2 = jax.random.uniform(k2, (H, E), dtype, -bound2, bound2)
    b2 = jax.random.uniform(kb2, (1, E), dtype, -bound2, bound2)
    return w1, b1, w2, b2


if __name__ == "__main__":
    key = jax.random.PRNGKey(0)

    # Case 1: toy config from the module spec (emb_dim=32 -> hidden=128).
    # Single-H-pass kernel, f32 output, no accumulator.
    B, S, E = 2, 8, 32
    H = 4 * E
    kx, kp = jax.random.split(key)
    w1, b1, w2, b2 = _make_params(kp, E, H)
    x = jax.random.normal(kx, (B, S, E), jnp.float32)

    params = prepare_ffn_params(w1, b1, w2, b2)
    out = jax.block_until_ready(feed_forward_padded(x, params))
    ref = feed_forward_ref(x, w1, b1, w2, b2)
    assert out.shape == (B, S, E)
    assert jnp.allclose(out, ref, atol=1e-4, rtol=1e-4), "mismatch vs reference (case 1)"

    # Case 2: unaligned E/H (E=160 -> H=640, M=128) with th forced to 128 so
    # the H-tiled f32 accumulate-into-output kernel path is exercised
    # (and no H over-padding: Hp stays 640, not 1024).
    B2, S2, E2 = 2, 64, 160
    H2 = 4 * E2
    kx2, kp2 = jax.random.split(jax.random.PRNGKey(0), 2)
    w1b, b1b, w2b, b2b = _make_params(kp2, E2, H2)
    x2 = jax.random.normal(kx2, (B2, S2, E2), jnp.float32)

    params2 = prepare_ffn_params(w1b, b1b, w2b, b2b)
    out2 = jax.block_until_ready(feed_forward_padded(x2, params2, th=128))
    ref2 = feed_forward_ref(x2, w1b, b1b, w2b, b2b)
    assert out2.shape == (B2, S2, E2)
    assert jnp.allclose(out2, ref2, atol=1e-4, rtol=1e-4), "mismatch vs reference (case 2)"

    # Case 3: non-f32 output exercises the VMEM-scratch accumulator path.
    out3 = jax.block_until_ready(
        feed_forward_padded(x2, params2, th=128, out_dtype=jnp.bfloat16))
    assert out3.dtype == jnp.bfloat16
    assert jnp.allclose(out3.astype(jnp.float32), ref2, atol=3e-2, rtol=3e-2), \
        "mismatch vs reference (case 3, bf16 output)"

    print("KERNEL_OK")
</pallas_src>

<mosaic_0001>
module attributes {stable_mosaic.version = 11 : i64} {
  func.func @_ffn_kernel_single(%arg0: i32, %arg1: memref<16x128xf32, #tpu.memory_space<vmem>>, %arg2: memref<128x128xf32, #tpu.memory_space<vmem>>, %arg3: memref<1x128xf32, #tpu.memory_space<vmem>>, %arg4: memref<128x128xf32, #tpu.memory_space<vmem>>, %arg5: memref<1x128xf32, #tpu.memory_space<vmem>>, %arg6: memref<16x128xf32, #tpu.memory_space<vmem>>) attributes {dimension_semantics = [#tpu.dimension_semantics<parallel>], iteration_bounds = array<i64: 1>, scalar_prefetch = 0 : i64, scratch_operands = 0 : i64, tpu.core_type = #tpu.core_type<tc>, window_params = [{transform_indices = @transform_0, window_bounds = array<i64: 16, 128>}, {pipeline_mode = #tpu.pipeline_mode<synchronous>, transform_indices = @transform_1, window_bounds = array<i64: 128, 128>}, {pipeline_mode = #tpu.pipeline_mode<synchronous>, transform_indices = @transform_2, window_bounds = array<i64: 1, 128>}, {pipeline_mode = #tpu.pipeline_mode<synchronous>, transform_indices = @transform_3, window_bounds = array<i64: 128, 128>}, {pipeline_mode = #tpu.pipeline_mode<synchronous>, transform_indices = @transform_4, window_bounds = array<i64: 1, 128>}, {transform_indices = @transform_5, window_bounds = array<i64: 16, 128>}]} {
    %c0 = arith.constant 0 : index
    %c0_0 = arith.constant 0 : index
    %0 = vector.load %arg1[%c0, %c0_0] : memref<16x128xf32, #tpu.memory_space<vmem>>, vector<16x128xf32>
    %c0_1 = arith.constant 0 : index
    %c0_2 = arith.constant 0 : index
    %1 = vector.load %arg2[%c0_1, %c0_2] : memref<128x128xf32, #tpu.memory_space<vmem>>, vector<128x128xf32>
    %cst = arith.constant dense<0.000000e+00> : vector<16x128xf32>
    %2 = tpu.matmul %0, %1, %cst {dimension_numbers = #tpu.dot_dimension_numbers<[1], [0], [0], [1], [0, 0, 1, 1], [], []>} : vector<16x128xf32>, vector<128x128xf32>, vector<16x128xf32> -> vector<16x128xf32>
    %c0_3 = arith.constant 0 : index
    %c0_4 = arith.constant 0 : index
    %3 = vector.load %arg3[%c0_3, %c0_4] : memref<1x128xf32, #tpu.memory_space<vmem>>, vector<1x128xf32>
    %4 = vector.broadcast %3 : vector<1x128xf32> to vector<16x128xf32>
    %5 = arith.addf %2, %4 : vector<16x128xf32>
    %cst_5 = arith.constant 0.636619746 : f32
    %6 = math.sqrt %cst_5 : f32
    %cst_6 = arith.constant 5.000000e-01 : f32
    %7 = vector.broadcast %cst_6 : f32 to vector<16x128xf32>
    %8 = arith.mulf %7, %5 : vector<16x128xf32>
    %9 = arith.mulf %5, %5 : vector<16x128xf32>
    %10 = arith.mulf %9, %5 : vector<16x128xf32>
    %cst_7 = arith.constant 4.471500e-02 : f32
    %11 = vector.broadcast %cst_7 : f32 to vector<16x128xf32>
    %12 = arith.mulf %11, %10 : vector<16x128xf32>
    %13 = arith.addf %5, %12 : vector<16x128xf32>
    %14 = vector.broadcast %6 : f32 to vector<16x128xf32>
    %15 = arith.mulf %14, %13 : vector<16x128xf32>
    %16 = math.tanh %15 : vector<16x128xf32>
    %cst_8 = arith.constant 1.000000e+00 : f32
    %17 = vector.broadcast %cst_8 : f32 to vector<16x128xf32>
    %18 = arith.addf %17, %16 : vector<16x128xf32>
    %19 = arith.mulf %8, %18 : vector<16x128xf32>
    %c0_9 = arith.constant 0 : index
    %c0_10 = arith.constant 0 : index
    %20 = vector.load %arg4[%c0_9, %c0_10] : memref<128x128xf32, #tpu.memory_space<vmem>>, vector<128x128xf32>
    %cst_11 = arith.constant dense<0.000000e+00> : vector<16x128xf32>
    %21 = tpu.matmul %19, %20, %cst_11 {dimension_numbers = #tpu.dot_dimension_numbers<[1], [0], [0], [1], [0, 0, 1, 1], [], []>} : vector<16x128xf32>, vector<128x128xf32>, vector<16x128xf32> -> vector<16x128xf32>
    %c0_12 = arith.constant 0 : index
    %c0_13 = arith.constant 0 : index
    %22 = vector.load %arg5[%c0_12, %c0_13] : memref<1x128xf32, #tpu.memory_space<vmem>>, vector<1x128xf32>
    %23 = vector.broadcast %22 : vector<1x128xf32> to vector<16x128xf32>
    %24 = arith.addf %21, %23 : vector<16x128xf32>
    %c0_14 = arith.constant 0 : index
    %c0_15 = arith.constant 0 : index
    %25 = vector.load %arg6[%c0_14, %c0_15] : memref<16x128xf32, #tpu.memory_space<vmem>>, vector<16x128xf32>
    tpu.vector_store %arg6[%c0_14, %c0_15], %24 {strides = array<i32>} : memref<16x128xf32, #tpu.memory_space<vmem>>, vector<16x128xf32>,
    return
  }
  func.func @transform_0(%arg0: i32) -> (i32, i32) {
    %c0_i32 = arith.constant 0 : i32
    %c0_i32_0 = arith.constant 0 : i32
    return %arg0, %c0_i32 : i32, i32
  }
  func.func @transform_1(%arg0: i32) -> (i32, i32) {
    %c0_i32 = arith.constant 0 : i32
    %c0_i32_0 = arith.constant 0 : i32
    %c0_i32_1 = arith.constant 0 : i32
    return %c0_i32, %c0_i32_0 : i32, i32
  }
  func.func @transform_2(%arg0: i32) -> (i32, i32) {
    %c0_i32 = arith.constant 0 : i32
    %c0_i32_0 = arith.constant 0 : i32
    %c0_i32_1 = arith.constant 0 : i32
    return %c0_i32, %c0_i32_0 : i32, i32
  }
  func.func @transform_3(%arg0: i32) -> (i32, i32) {
    %c0_i32 = arith.constant 0 : i32
    %c0_i32_0 = arith.constant 0 : i32
    %c0_i32_1 = arith.constant 0 : i32
    return %c0_i32, %c0_i32_0 : i32, i32
  }
  func.func @transform_4(%arg0: i32) -> (i32, i32) {
    %c0_i32 = arith.constant 0 : i32
    %c0_i32_0 = arith.constant 0 : i32
    %c0_i32_1 = arith.constant 0 : i32
    return %c0_i32, %c0_i32_0 : i32, i32
  }
  func.func @transform_5(%arg0: i32) -> (i32, i32) {
    %c0_i32 = arith.constant 0 : i32
    %c0_i32_0 = arith.constant 0 : i32
    return %arg0, %c0_i32 : i32, i32
  }
}

</mosaic_0001>

<bundles_post_ra>
// kernel: tpu_custom_call.1
= control target key start
LH: loop header
LB: loop body
LE: loop exit
PB: predicated region body
PF: predicated region fallthrough
CT: control target
= control target key end

     0   :  { %10 = vsyncpa [#allocation3], 0  ;;  %s683_s0 = inlined_call_operand.hbm [shape: f32[16,128], index: 0, kind: input, shape index: {}]   ;;  %s684_s1 = inlined_call_operand.hbm [shape: f32[128,128], index: 1, kind: input, shape index: {}]   ;;  %s685_s2 = inlined_call_operand.vmem [shape: f32[1,128], index: 2, kind: input, shape index: {}]   ;;  %s686_s3 = inlined_call_operand.hbm [shape: f32[128,128], index: 3, kind: input, shape index: {}]   ;;  %s687_s4 = inlined_call_operand.vmem [shape: f32[1,128], index: 4, kind: input, shape index: {}]   ;;  %s688_s5 = inlined_call_operand.hbm [shape: f32[16,128], index: 5, kind: output, shape index: {}]  }
   0x1   :  { %11 = vsyncpa [#allocation6], 0 }
   0x2   :  { %12 = vsyncpa [#allocation4], 0  ;;  %s574_s18 = smov [#allocation5]   ;;  %s575_s20 = smov [#allocation2]  }
   0x3   :  { %s30_s19 = sshll.u32 %s574_s18, 4  ;;  %s18_s21 = sshll.u32 %s575_s20, 4  ;;  %s31_s19 = int_to_ptr.vmem [resolvable:$true] %s30_s19  ;;  %s610_s21 = int_to_ptr.vmem [resolvable:$true] %s18_s21 }
   0x4   :  { %s480_s24 = scalar_lea.hbm %s684_s1, 2048 }
   0x5   :  { %p481_p0 = scmp.ne.s32.totalorder %s684_s1, %s480_s24  ;;  %p484_p1 = scmp.lt.u32.totalorder %s480_s24, %s684_s1 }
   0x7   :  { %p486_p2 = pnand %p484_p1, %p481_p0 }
   0x9   :  { %489 = shalt.err (!%p486_p2)
}
   0xa   :  { %s490_s29 = scalar_lea.vmem %s31_s19, 2048  ;;  %p495_p4 = scmp.lt.s32.totalorder %s31_s19, %s31_s19 }
   0xb   :  { %p491_p3 = scmp.ne.s32.totalorder %s31_s19, %s490_s29  ;;  %p496_p5 = scmp.lt.s32.totalorder %s490_s29, %s490_s29 }
   0xd   :  { %p497_p6 = por %p496_p5, %p495_p4 }
   0xf   :  { %p498_p7 = pnand %p497_p6, %p491_p3 }
  0x11   :  { %501 = shalt.err (!%p498_p7)
}
  0x12   :  { %s576_s30 = smov 128   ;;  %s577_s6 = smov 8  }
  0x13   :  { %36 = dma.hbm_to_vmem [thread:$0]  %s684_s1, 2048, %s31_s19, [#allocation6], %s576_s30, %s576_s30, %s577_s6  }
  0x14   :  { %s502_s11 = scalar_lea.hbm %s683_s0, 256 }
  0x15   :  { %p503_p8 = scmp.ne.s32.totalorder %s683_s0, %s502_s11  ;;  %p506_p9 = scmp.lt.u32.totalorder %s502_s11, %s683_s0 }
  0x17   :  { %p508_p10 = pnand %p506_p9, %p503_p8 }
  0x19   :  { %511 = shalt.err (!%p508_p10)
}
  0x1a   :  { %s512_s16 = scalar_lea.vmem %s610_s21, 256  ;;  %p517_p12 = scmp.lt.s32.totalorder %s610_s21, %s610_s21 }
  0x1b   :  { %p513_p11 = scmp.ne.s32.totalorder %s610_s21, %s512_s16  ;;  %p518_p13 = scmp.lt.s32.totalorder %s512_s16, %s512_s16 }
  0x1d   :  { %p519_p0 = por %p518_p13, %p517_p12 }
  0x1f   :  { %p520_p1 = pnand %p519_p0, %p513_p11 }
  0x21   :  { %523 = shalt.err (!%p520_p1)
}
  0x22   :  { %24 = dma.hbm_to_vmem [thread:$0]  %s683_s0, 256, %s610_s21, [#allocation3], %s576_s30, %s576_s30, %s577_s6  }
  0x23   :  { %s578_s18 = smov [#allocation7]   ;;  %s524_s23 = scalar_lea.hbm %s686_s3, 2048 }
  0x24   :  { %s44_s19 = sshll.u32 %s578_s18, 4  ;;  %p525_p2 = scmp.ne.s32.totalorder %s686_s3, %s524_s23  ;;  %s45_s19 = int_to_ptr.vmem [resolvable:$true] %s44_s19 }
  0x25   :  { %p528_p3 = scmp.lt.u32.totalorder %s524_s23, %s686_s3 }
  0x27   :  { %p530_p4 = pnand %p528_p3, %p525_p2 }
  0x29   :  { %533 = shalt.err (!%p530_p4)
}
  0x2a   :  { %s534_s28 = scalar_lea.vmem %s45_s19, 2048  ;;  %p539_p6 = scmp.lt.s32.totalorder %s45_s19, %s45_s19 }
  0x2b   :  { %p535_p5 = scmp.ne.s32.totalorder %s45_s19, %s534_s28  ;;  %p540_p7 = scmp.lt.s32.totalorder %s534_s28, %s534_s28 }
  0x2d   :  { %p541_p8 = por %p540_p7, %p539_p6 }
  0x2f   :  { %p542_p9 = pnand %p541_p8, %p535_p5 }
  0x31   :  { %545 = shalt.err (!%p542_p9)
}
  0x32   :  { %50 = dma.hbm_to_vmem [thread:$0]  %s686_s3, 2048, %s45_s19, [#allocation6], %s576_s30, %s576_s30, %s577_s6  }
  0x33   :  { %568 = dma.done.wait [#allocation3], 256  }
  0x34   :  { %569 = vsyncadd [#allocation3], 4294967040 }
  0x35   :  { %570 = dma.done.wait [#allocation6], 4096  }
  0x36   :  { %571 = vsyncadd [#allocation6], 4294963200  ;;  %v64_v0 = vld [vmem:[#allocation5] sm:$0xff]  ;;  %v65_v1 = vld [vmem:[#allocation5 + $0x8] sm:$0xff]  ;;  %s579_s8 = smov [#allocation8]  }
  0x37   :  { %v66_v2 = vld [vmem:[#allocation5 + $0x10] sm:$0xff]  ;;  %v406_v3 = vpack.c.bf16 %v65_v1, %v64_v0  ;;  %v67_v4 = vld [vmem:[#allocation5 + $0x18] sm:$0xff]  ;;  %v68_v6 = vld [vmem:[#allocation5 + $0x20] sm:$0xff]  ;;  %s285_s9 = sshll.u32 %s579_s8, 4  ;;  %s286_s9 = int_to_ptr.vmem [resolvable:$true] %s285_s9 }
  0x38   :  { %v410_v5 = vpack.c.bf16 %v67_v4, %v66_v2  ;;  %v69_v7 = vld [vmem:[#allocation5 + $0x28] sm:$0xff]  ;;  %v70_v9 = vld [vmem:[#allocation5 + $0x30] sm:$0xff]  ;;  %v71_v11 = vld [vmem:[#allocation5 + $0x38] sm:$0xff]  ;;  %s546_s10 = scalar_lea.vmem %s286_s9, 256  ;;  %p551_p11 = scmp.lt.s32.totalorder %s286_s9, %s286_s9 }
  0x39   :  { %407 = vmatprep.subr.bf16.mxu0 %v406_v3  ;;  %v414_v8 = vpack.c.bf16 %v69_v7, %v68_v6  ;;  %v62_v10 = vld [vmem:[#allocation2] sm:$0xff]  ;;  %v180_v12 = vld [vmem:[#allocation7] sm:$0xff]  ;;  %v181_v13 = vld [vmem:[#allocation7 + $0x8] sm:$0xff]  ;;  %v418_v15 = vpack.c.bf16 %v71_v11, %v70_v9  ;;  %p547_p10 = scmp.ne.s32.totalorder %s286_s9, %s546_s10  ;;  %p552_p12 = scmp.lt.s32.totalorder %s546_s10, %s546_s10 }
  0x3a   :  { %409 = vmatpush3.bf16.msra.mxu0 %v406_v3  ;;  %368 = vmatprep.mubr.f32.mxu0 %v62_v10  ;;  %v438_v14 = vpack.c.bf16 %v181_v13, %v180_v12  ;;  %v72_v16 = vld [vmem:[#allocation5 + $0x40] sm:$0xff]  ;;  %v73_v17 = vld [vmem:[#allocation5 + $0x48] sm:$0xff]  ;;  %v74_v19 = vld [vmem:[#allocation5 + $0x50] sm:$0xff] }
  0x3b   :  { %411 = vmatprep.subr.bf16.mxu0 %v410_v5  ;;  %v422_v18 = vpack.c.bf16 %v73_v17, %v72_v16  ;;  %v75_v20 = vld [vmem:[#allocation5 + $0x58] sm:$0xff]  ;;  %v76_v22 = vld [vmem:[#allocation5 + $0x60] sm:$0xff]  ;;  %v77_v23 = vld [vmem:[#allocation5 + $0x68] sm:$0xff]  ;;  %p553_p13 = por %p552_p12, %p551_p11 }
  0x3c   :  { %439 = vmatprep.subr.bf16.mxu1 %v438_v14  ;;  %v426_v21 = vpack.c.bf16 %v75_v20, %v74_v19  ;;  %v430_v24 = vpack.c.bf16 %v77_v23, %v76_v22  ;;  %v78_v25 = vld [vmem:[#allocation5 + $0x70] sm:$0xff]  ;;  %v79_v26 = vld [vmem:[#allocation5 + $0x78] sm:$0xff]  ;;  %v184_v32 = vld [vmem:[#allocation7 + $0x20] sm:$0xff] }
  0x3d   :  { %441 = vmatpush3.bf16.msra.mxu1 %v438_v14  ;;  %v434_v27 = vpack.c.bf16 %v79_v26, %v78_v25  ;;  %v63_v28 = vld [vmem:[#allocation2 + $0x8] sm:$0xff]  ;;  %v182_v29 = vld [vmem:[#allocation7 + $0x10] sm:$0xff]  ;;  %v185_v33 = vld [vmem:[#allocation7 + $0x28] sm:$0xff]  ;;  %p554_p0 = pnand %p553_p13, %p547_p10 }
  0x3e   :  { %413 = vmatpush3.bf16.msra.mxu0 %v410_v5  ;;  %v183_v30 = vld [vmem:[#allocation7 + $0x18] sm:$0xff]  ;;  %v446_v34 = vpack.c.bf16 %v185_v33, %v184_v32  ;;  %v186_v35 = vld [vmem:[#allocation7 + $0x30] sm:$0xff]  ;;  %v188_v38 = vld [vmem:[#allocation7 + $0x40] sm:$0xff] }
  0x3f   :  { %415 = vmatprep.subr.bf16.mxu0 %v414_v8  ;;  %v442_v31 = vpack.c.bf16 %v183_v30, %v182_v29  ;;  %v187_v36 = vld [vmem:[#allocation7 + $0x38] sm:$0xff]  ;;  %v189_v39 = vld [vmem:[#allocation7 + $0x48] sm:$0xff]  ;;  %v190_v40 = vld [vmem:[#allocation7 + $0x50] sm:$0xff] }
  0x40   :  { %v450_v37 = vpack.c.bf16 %v187_v36, %v186_v35  ;;  %v454_v41 = vpack.c.bf16 %v189_v39, %v188_v38  ;;  %v191_v42 = vld [vmem:[#allocation7 + $0x58] sm:$0xff]  ;;  %v192_v44 = vld [vmem:[#allocation7 + $0x60] sm:$0xff]  ;;  %v193_v45 = vld [vmem:[#allocation7 + $0x68] sm:$0xff] }
  0x41   :  { %443 = vmatprep.subr.bf16.mxu1 %v442_v31  ;;  %v458_v43 = vpack.c.bf16 %v191_v42, %v190_v40  ;;  %v462_v46 = vpack.c.bf16 %v193_v45, %v192_v44  ;;  %v194_v47 = vld [vmem:[#allocation7 + $0x70] sm:$0xff]  ;;  %v195_v48 = vld [vmem:[#allocation7 + $0x78] sm:$0xff] }
  0x42   :  { %417 = vmatpush3.bf16.msra.mxu0 %v414_v8  ;;  %445 = vmatpush3.bf16.msra.mxu1 %v442_v31  ;;  %v466_v49 = vpack.c.bf16 %v195_v48, %v194_v47  ;;  %v298_v50 = vld [vmem:[%s685_s2] ss:$0 sm:$0xff] }
  0x43   :  { %419 = vmatprep.subr.bf16.mxu0 %v418_v15  ;;  %447 = vmatprep.subr.bf16.mxu1 %v446_v34  ;;  %v299_v9 = vld [vmem:[%s687_s4] ss:$0 sm:$0xff] }
  0x46   :  { %421 = vmatpush3.bf16.msra.mxu0 %v418_v15  ;;  %449 = vmatpush3.bf16.msra.mxu1 %v446_v34 }
  0x47   :  { %423 = vmatprep.subr.bf16.mxu0 %v422_v18  ;;  %451 = vmatprep.subr.bf16.mxu1 %v450_v37 }
  0x4a   :  { %425 = vmatpush3.bf16.msra.mxu0 %v422_v18  ;;  %453 = vmatpush3.bf16.msra.mxu1 %v450_v37 }
  0x4b   :  { %427 = vmatprep.subr.bf16.mxu0 %v426_v21  ;;  %455 = vmatprep.subr.bf16.mxu1 %v454_v41 }
  0x4e   :  { %429 = vmatpush3.bf16.msra.mxu0 %v426_v21  ;;  %457 = vmatpush3.bf16.msra.mxu1 %v454_v41 }
  0x4f   :  { %431 = vmatprep.subr.bf16.mxu0 %v430_v24  ;;  %459 = vmatprep.subr.bf16.mxu1 %v458_v43 }
  0x52   :  { %433 = vmatpush3.bf16.msra.mxu0 %v430_v24  ;;  %461 = vmatpush3.bf16.msra.mxu1 %v458_v43 }
  0x53   :  { %435 = vmatprep.subr.bf16.mxu0 %v434_v27  ;;  %463 = vmatprep.subr.bf16.mxu1 %v462_v46 }
  0x56   :  { %437 = vmatpush3.bf16.msra.mxu0 %v434_v27  ;;  %465 = vmatpush3.bf16.msra.mxu1 %v462_v46 }
  0x57   :  { %467 = vmatprep.subr.bf16.mxu1 %v466_v49 }
  0x59   :  { %369 = vmatmul.mubr.f32.vlgmr.msra.gmra.mrb[0].mxu0 %v63_v28 }
  0x5a   :  { %469 = vmatpush3.bf16.msra.mxu1 %v466_v49 }
 0x12c   :  { %v370_v51 = vpop.f32.mrb[0].mxu0 }
 0x12d   :  { %v159_v52 = vadd.f32 %v370_v51, %v298_v50  ;;  %v153_v53 = vpop.f32.mrb[1].mxu0 }
 0x12e   :  { %v154_v54 = vadd.f32 %v298_v50, %v153_v53 }
 0x12f   :  { %v165_v55 = vmul.f32 %v159_v52, %v159_v52  ;;  %v163_v6 = vmul.f32 0.5, %v159_v52 }
 0x130   :  { %v164_v56 = vmul.f32 %v154_v54, %v154_v54  ;;  %v162_v4 = vmul.f32 0.5, %v154_v54 }
 0x131   :  { %v167_v57 = vmul.f32 %v165_v55, %v159_v52 }
 0x132   :  { %v166_v58 = vmul.f32 %v164_v56, %v154_v54 }
 0x133   :  { %v169_v59 = vmul.f32 0.044715, %v167_v57 }
 0x134   :  { %v168_v60 = vmul.f32 0.044715, %v166_v58 }
 0x135   :  { %v171_v61 = vadd.f32 %v169_v59, %v159_v52 }
 0x136   :  { %v170_v62 = vadd.f32 %v168_v60, %v154_v54 }
 0x137   :  { %v173_v63 = vmul.f32 0.7978845, %v171_v61 }
 0x138   :  { %v172_v0 = vmul.f32 0.7978845, %v170_v62 }
 0x139   :  { %476 = vtanh.f32 %v173_v63 }
 0x13a   :  { %478 = vtanh.f32 %v172_v0 }
 0x143   :  { %v477_v1 = vpop.eup %476 }
 0x144   :  { %v479_v2 = vpop.eup %478  ;;  %v177_v3 = vadd.f32 1.0, %v477_v1 }
 0x145   :  { %v176_v5 = vadd.f32 1.0, %v479_v2 }
 0x146   :  { %v179_v8 = vmul.f32 %v177_v3, %v163_v6 }
 0x147   :  { %v178_v7 = vmul.f32 %v176_v5, %v162_v4 }
 0x149   :  { %403 = vmatprep.mubr.f32.mxu1 %v178_v7 }
 0x14a   :  { %404 = vmatmul.mubr.f32.vlgmr.msra.gmra.mrb[0].mxu1 %v179_v8 }
 0x21d   :  { %v405_v10 = vpop.f32.mrb[0].mxu1 }
 0x21e   :  { %v275_v11 = vadd.f32 %v405_v10, %v299_v9  ;;  %v269_v12 = vpop.f32.mrb[1].mxu1 }
 0x21f   :  { %v270_v13 = vadd.f32 %v299_v9, %v269_v12 }
 0x220   :  { %279 = vst [vmem:[#allocation8 + $0x8] sm:$0xff] %v275_v11 }
 0x221   :  { %278 = vst [vmem:[#allocation8] sm:$0xff] %v270_v13 }
 0x222   :  { %557 = shalt.err (!%p554_p0)
}
 0x223   :  { %s558_s4 = scalar_lea.hbm %s688_s5, 256 }
 0x224   :  { %p559_p1 = scmp.ne.s32.totalorder %s688_s5, %s558_s4  ;;  %p562_p2 = scmp.lt.u32.totalorder %s558_s4, %s688_s5 }
 0x226   :  { %p564_p3 = pnand %p562_p2, %p559_p1 }
 0x228   :  { %567 = shalt.err (!%p564_p3)
}
 0x229   :  { %291 = dma.vmem_to_hbm [thread:$0]  %s286_s9, 256, %s688_s5, [#allocation4], %s576_s30, %s576_s30, %s577_s6  }
 0x22a   :  { %572 = dma.done.wait [#allocation4], 256  }
 0x22b   :  { %573 = vsyncadd [#allocation4], 4294967040 }
 0x22c   :  { %295 = vsyncpa [#allocation3], 1 }
 0x22d   :  { %296 = vsyncpa [#allocation6], 1 }
 0x22e   :  { %297 = vsyncpa [#allocation4], 1 }

</bundles_post_ra>
